<compile_context>
chip_gen: v7x
topology: tpu7x:2x2x1
jax: 0.10.0
libtpu: 0.0.40
codegen_flags: <defaults>
</compile_context>

<pallas_src>
import math

import jax
import jax.numpy as jnp
from jax.experimental import pallas as pl
from jax.experimental.pallas import tpu as pltpu


def _round_up(a: int, b: int) -> int:
    return (a + b - 1) // b * b


def _gelu_exact(x):
    # PyTorch nn.GELU() default: 0.5 * x * (1 + erf(x / sqrt(2))) (exact erf).
    inv_sqrt2 = jnp.asarray(1.0 / math.sqrt(2.0), dtype=x.dtype)
    return 0.5 * x * (1.0 + jax.lax.erf(x * inv_sqrt2))


def _pick_tn(d_out: int, target: int) -> int:
    """Largest multiple of 128 that divides round_up(d_out, 128) and <= target."""
    n128 = _round_up(max(d_out, 1), 128)
    target = max(128, min(target, n128))
    units = n128 // 128
    best = 128
    for d in range(1, units + 1):
        if units % d == 0 and d * 128 <= target:
            best = d * 128
    return best


def vision_head_kernel(x_ref, w1_ref, b1_ref, w2_ref, b2_ref, o_ref, h_ref):
    # Grid: (row tile i, vocab tile j), j innermost and sequential ("arbitrary").
    #   x_ref:  (tm, n_embed)        -- same block for every j
    #   w1_ref: (n_embed, d_mid)     -- resident, single-buffered
    #   b1_ref: (1, d_mid)           -- resident, single-buffered
    #   w2_ref: (d_mid, tn)          -- streamed over j
    #   b2_ref: (1, tn)              -- streamed over j
    #   o_ref:  (tm, tn)
    #   h_ref:  (tm, d_mid) scratch in w2.dtype -- layer-1 activations cached
    #           per row tile.  NOTE: relies on j == 0 running first for each
    #           row tile; the j axis must stay innermost and non-parallel.
    j = pl.program_id(1)

    @pl.when(j == 0)
    def _():
        h = jnp.dot(x_ref[...], w1_ref[...], preferred_element_type=jnp.float32)
        h = h + b1_ref[...].astype(jnp.float32)
        h_ref[...] = _gelu_exact(h).astype(h_ref.dtype)

    out = jnp.dot(h_ref[...], w2_ref[...], preferred_element_type=jnp.float32)
    out = out + b2_ref[...].astype(jnp.float32)
    o_ref[...] = out.astype(o_ref.dtype)


def vision_head(x, w1, b1, w2, b2, *, tm=None, tn=None,
                out_dtype=jnp.float32, vmem_limit_bytes=None):
    """x: (..., n_embed); w1: (n_embed, d_mid); w2: (d_mid, d_out).

    Weights are pre-transposed vs. PyTorch's (out, in) Linear layout.
    Returns (..., d_out) in `out_dtype` (fp32 by default).
    """
    orig_shape = x.shape
    n_embed = orig_shape[-1]
    d_mid = w1.shape[1]
    d_out = w2.shape[1]

    xm = x.reshape(-1, n_embed)
    M = max(xm.shape[0], 1)

    # ---- VMEM budget -------------------------------------------------------
    if vmem_limit_bytes is None:
        try:
            vmem_cap = pltpu.get_tpu_info().vmem_capacity_bytes
        except Exception:  # conservative fallback if the query is unavailable
            vmem_cap = 128 << 20
        # 96 MiB on 128-MiB parts (v5e/v6e), ~48 MiB on 64-MiB v7x.
        vmem_limit_bytes = int(min(96 << 20, (vmem_cap * 3) // 4))

    # ---- Tile selection ----------------------------------------------------
    # Rows: a single tile for small M (stream w2 exactly once); 512 otherwise.
    # On v7x, callers may pass tm = round_up(ceil(M/2), 8) to get exactly two
    # row tiles and use both TensorCores.
    if tm is None:
        tm = _round_up(M, 8) if M <= 1024 else 512
    tm = min(_round_up(max(tm, 8), 8), _round_up(M, 8))

    # Vocab: lane-dense, divides round_up(d_out, 128) (no HBM re-pad of w2 for
    # real vocab sizes which are multiples of 128).
    if tn is None:
        tn = 2048
    tn = _pick_tn(d_out, tn)

    x_b = jnp.dtype(xm.dtype).itemsize
    w1_b = jnp.dtype(w1.dtype).itemsize
    w2_b = jnp.dtype(w2.dtype).itemsize
    o_b = jnp.dtype(out_dtype).itemsize

    def _vmem_est(tm_, tn_):
        return (2 * tm_ * n_embed * x_b          # x tile (double-buffered)
                + 1 * n_embed * d_mid * w1_b     # w1 resident (single buffer)
                + 1 * d_mid * 4                  # b1
                + 2 * d_mid * tn_ * w2_b         # w2 tile (double-buffered)
                + 2 * tn_ * 4                    # b2
                + 2 * tm_ * tn_ * o_b            # out tile (double-buffered)
                + tm_ * d_mid * w2_b)            # h scratch (w2.dtype)

    budget = int(vmem_limit_bytes * 0.9)
    while _vmem_est(tm, tn) > budget and tn > 512:
        tn = _pick_tn(d_out, tn // 2)
    while _vmem_est(tm, tn) > budget and tm > 256:
        tm = max(256, _round_up(tm // 2, 8))

    m_pad = _round_up(M, tm)
    n_pad = _round_up(d_out, tn)   # == round_up(d_out, 128) by construction

    # Pad rows; pad the vocab dim only when d_out is not a 128-multiple
    # (never the case for real image_token_size values).
    if m_pad != xm.shape[0]:
        xm = jnp.pad(xm, ((0, m_pad - xm.shape[0]), (0, 0)))
    b1_2d = b1.reshape(1, d_mid)
    w2_p = w2
    b2_2d = b2.reshape(1, d_out)
    if n_pad != d_out:
        w2_p = jnp.pad(w2_p, ((0, 0), (0, n_pad - d_out)))
        b2_2d = jnp.pad(b2_2d, ((0, 0), (0, n_pad - d_out)))

    grid = (m_pad // tm, n_pad // tn)

    # Advisory cost hint for the XLA scheduler around this call.
    flops = 2 * m_pad * (n_embed * d_mid + d_mid * n_pad)
    transcendentals = m_pad * d_mid  # one erf per layer-1 activation
    bytes_accessed = (
        xm.size * xm.dtype.itemsize
        + w1.size * w1.dtype.itemsize
        + b1_2d.size * b1_2d.dtype.itemsize
        + grid[0] * (w2_p.size * w2_p.dtype.itemsize
                     + b2_2d.size * b2_2d.dtype.itemsize)
        + m_pad * n_pad * o_b
    )

    out = pl.pallas_call(
        vision_head_kernel,
        out_shape=jax.ShapeDtypeStruct((m_pad, n_pad), out_dtype),
        grid_spec=pltpu.PrefetchScalarGridSpec(
            num_scalar_prefetch=0,
            grid=grid,
            in_specs=[
                pl.BlockSpec((tm, n_embed), lambda i, j: (i, 0)),
                # Resident operands: constant index map -> one buffer is enough.
                pl.BlockSpec((n_embed, d_mid), lambda i, j: (0, 0),
                             pipeline_mode=pl.Buffered(1)),
                pl.BlockSpec((1, d_mid), lambda i, j: (0, 0),
                             pipeline_mode=pl.Buffered(1)),
                # Streamed operands (default double-buffering).
                pl.BlockSpec((d_mid, tn), lambda i, j: (0, j)),
                pl.BlockSpec((1, tn), lambda i, j: (0, j)),
            ],
            out_specs=pl.BlockSpec((tm, tn), lambda i, j: (i, j)),
            # Layer-1 activation cache lives in w2's dtype so the second dot
            # consumes it directly (no per-step VPU cast, half the scratch when
            # weights are bf16).
            scratch_shapes=[pltpu.VMEM((tm, d_mid), w2.dtype)],
        ),
        compiler_params=pltpu.CompilerParams(
            dimension_semantics=("parallel", "arbitrary"),
            vmem_limit_bytes=vmem_limit_bytes,
        ),
        cost_estimate=pl.CostEstimate(
            flops=int(flops),
            transcendentals=int(transcendentals),
            bytes_accessed=int(bytes_accessed),
        ),
    )(xm, w1, b1_2d, w2_p, b2_2d)

    out = out[:x.reshape(-1, n_embed).shape[0], :d_out]
    return out.reshape(*orig_shape[:-1], d_out)


if __name__ == "__main__":
    # Small synthetic config (params.n_embed, params.image_token_embed,
    # params.image_token_size).  Shapes are deliberately NOT tile multiples so
    # the row-padding and ragged-vocab paths are exercised.
    batch, seq = 2, 9
    n_embed = 32
    image_token_embed = 64
    image_token_size = 200

    key = jax.random.PRNGKey(0)
    kx, kw1, kb1, kw2, kb2 = jax.random.split(key, 5)

    x = jax.random.normal(kx, (batch, seq, n_embed), dtype=jnp.float32)
    # PyTorch Linear weight is (out, in); stored here already transposed (in, out).
    w1 = jax.random.normal(kw1, (n_embed, image_token_embed), jnp.float32) * 0.02
    b1 = jax.random.normal(kb1, (image_token_embed,), jnp.float32) * 0.01
    w2 = jax.random.normal(kw2, (image_token_embed, image_token_size), jnp.float32) * 0.02
    b2 = jax.random.normal(kb2, (image_token_size,), jnp.float32) * 0.01

    out = vision_head(x, w1, b1, w2, b2)
    out = jax.block_until_ready(out)

    # Pure-JAX reference of the fused module (exact GELU, like torch.nn.GELU()).
    h_ref = x @ w1 + b1
    h_ref = 0.5 * h_ref * (1.0 + jax.lax.erf(h_ref / jnp.sqrt(2.0)))
    ref = h_ref @ w2 + b2

    assert out.shape == (batch, seq, image_token_size)
    assert jnp.allclose(out, ref, atol=1e-5, rtol=1e-3), "mismatch vs reference"

    print("KERNEL_OK")
</pallas_src>

<mosaic_0001>
module attributes {stable_mosaic.version = 11 : i64} {
  func.func @vision_head_kernel(%arg0: i32, %arg1: i32, %arg2: memref<24x32xf32, #tpu.memory_space<vmem>>, %arg3: memref<32x64xf32, #tpu.memory_space<vmem>>, %arg4: memref<1x64xf32, #tpu.memory_space<vmem>>, %arg5: memref<64x256xf32, #tpu.memory_space<vmem>>, %arg6: memref<1x256xf32, #tpu.memory_space<vmem>>, %arg7: memref<24x256xf32, #tpu.memory_space<vmem>>, %arg8: memref<24x64xf32, #tpu.memory_space<vmem>>) attributes {dimension_semantics = [#tpu.dimension_semantics<parallel>, #tpu.dimension_semantics<arbitrary>], iteration_bounds = array<i64: 1, 1>, scalar_prefetch = 0 : i64, scratch_operands = 1 : i64, tpu.core_type = #tpu.core_type<tc>, window_params = [{transform_indices = @transform_0, window_bounds = array<i64: 24, 32>}, {pipeline_mode = #tpu.pipeline_mode<synchronous>, transform_indices = @transform_1, window_bounds = array<i64: 32, 64>}, {pipeline_mode = #tpu.pipeline_mode<synchronous>, transform_indices = @transform_2, window_bounds = array<i64: 1, 64>}, {transform_indices = @transform_3, window_bounds = array<i64: 64, 256>}, {transform_indices = @transform_4, window_bounds = array<i64: 1, 256>}, {transform_indices = @transform_5, window_bounds = array<i64: 24, 256>}]} {
    %c0_i32 = arith.constant 0 : i32
    %0 = arith.cmpi eq, %arg1, %c0_i32 : i32
    %1 = arith.extui %0 : i1 to i32
    %c0_i32_0 = arith.constant 0 : i32
    %2 = arith.cmpi ne, %1, %c0_i32_0 : i32
    scf.if %2 {
      %c0_8 = arith.constant 0 : index
      %c0_9 = arith.constant 0 : index
      %10 = vector.load %arg2[%c0_8, %c0_9] : memref<24x32xf32, #tpu.memory_space<vmem>>, vector<24x32xf32>
      %c0_10 = arith.constant 0 : index
      %c0_11 = arith.constant 0 : index
      %11 = vector.load %arg3[%c0_10, %c0_11] : memref<32x64xf32, #tpu.memory_space<vmem>>, vector<32x64xf32>
      %cst_12 = arith.constant dense<0.000000e+00> : vector<24x64xf32>
      %12 = tpu.matmul %10, %11, %cst_12 {dimension_numbers = #tpu.dot_dimension_numbers<[1], [0], [0], [1], [0, 0, 1, 1], [], []>} : vector<24x32xf32>, vector<32x64xf32>, vector<24x64xf32> -> vector<24x64xf32>
      %c0_13 = arith.constant 0 : index
      %c0_14 = arith.constant 0 : index
      %13 = vector.load %arg4[%c0_13, %c0_14] : memref<1x64xf32, #tpu.memory_space<vmem>>, vector<1x64xf32>
      %14 = vector.broadcast %13 : vector<1x64xf32> to vector<24x64xf32>
      %15 = arith.addf %12, %14 : vector<24x64xf32>
      %cst_15 = arith.constant 5.000000e-01 : f32
      %16 = vector.broadcast %cst_15 : f32 to vector<24x64xf32>
      %17 = arith.mulf %16, %15 : vector<24x64xf32>
      %cst_16 = arith.constant 0.707106769 : f32
      %18 = vector.broadcast %cst_16 : f32 to vector<24x64xf32>
      %19 = arith.mulf %15, %18 : vector<24x64xf32>
      %20 = math.erf %19 : vector<24x64xf32>
      %cst_17 = arith.constant 1.000000e+00 : f32
      %21 = vector.broadcast %cst_17 : f32 to vector<24x64xf32>
      %22 = arith.addf %21, %20 : vector<24x64xf32>
      %23 = arith.mulf %17, %22 : vector<24x64xf32>
      %c0_18 = arith.constant 0 : index
      %c0_19 = arith.constant 0 : index
      %24 = vector.load %arg8[%c0_18, %c0_19] : memref<24x64xf32, #tpu.memory_space<vmem>>, vector<24x64xf32>
      tpu.vector_store %arg8[%c0_18, %c0_19], %23 {strides = array<i32>} : memref<24x64xf32, #tpu.memory_space<vmem>>, vector<24x64xf32>,
    } else {
    }
    %c0 = arith.constant 0 : index
    %c0_1 = arith.constant 0 : index
    %3 = vector.load %arg8[%c0, %c0_1] : memref<24x64xf32, #tpu.memory_space<vmem>>, vector<24x64xf32>
    %c0_2 = arith.constant 0 : index
    %c0_3 = arith.constant 0 : index
    %4 = vector.load %arg5[%c0_2, %c0_3] : memref<64x256xf32, #tpu.memory_space<vmem>>, vector<64x256xf32>
    %cst = arith.constant dense<0.000000e+00> : vector<24x256xf32>
    %5 = tpu.matmul %3, %4, %cst {dimension_numbers = #tpu.dot_dimension_numbers<[1], [0], [0], [1], [0, 0, 1, 1], [], []>} : vector<24x64xf32>, vector<64x256xf32>, vector<24x256xf32> -> vector<24x256xf32>
    %c0_4 = arith.constant 0 : index
    %c0_5 = arith.constant 0 : index
    %6 = vector.load %arg6[%c0_4, %c0_5] : memref<1x256xf32, #tpu.memory_space<vmem>>, vector<1x256xf32>
    %7 = vector.broadcast %6 : vector<1x256xf32> to vector<24x256xf32>
    %8 = arith.addf %5, %7 : vector<24x256xf32>
    %c0_6 = arith.constant 0 : index
    %c0_7 = arith.constant 0 : index
    %9 = vector.load %arg7[%c0_6, %c0_7] : memref<24x256xf32, #tpu.memory_space<vmem>>, vector<24x256xf32>
    tpu.vector_store %arg7[%c0_6, %c0_7], %8 {strides = array<i32>} : memref<24x256xf32, #tpu.memory_space<vmem>>, vector<24x256xf32>,
    return
  }
  func.func @transform_0(%arg0: i32, %arg1: i32) -> (i32, i32) {
    %c0_i32 = arith.constant 0 : i32
    %c0_i32_0 = arith.constant 0 : i32
    return %arg0, %c0_i32 : i32, i32
  }
  func.func @transform_1(%arg0: i32, %arg1: i32) -> (i32, i32) {
    %c0_i32 = arith.constant 0 : i32
    %c0_i32_0 = arith.constant 0 : i32
    %c0_i32_1 = arith.constant 0 : i32
    return %c0_i32, %c0_i32_0 : i32, i32
  }
  func.func @transform_2(%arg0: i32, %arg1: i32) -> (i32, i32) {
    %c0_i32 = arith.constant 0 : i32
    %c0_i32_0 = arith.constant 0 : i32
    %c0_i32_1 = arith.constant 0 : i32
    return %c0_i32, %c0_i32_0 : i32, i32
  }
  func.func @transform_3(%arg0: i32, %arg1: i32) -> (i32, i32) {
    %c0_i32 = arith.constant 0 : i32
    %c0_i32_0 = arith.constant 0 : i32
    return %c0_i32, %arg1 : i32, i32
  }
  func.func @transform_4(%arg0: i32, %arg1: i32) -> (i32, i32) {
    %c0_i32 = arith.constant 0 : i32
    %c0_i32_0 = arith.constant 0 : i32
    return %c0_i32, %arg1 : i32, i32
  }
  func.func @transform_5(%arg0: i32, %arg1: i32) -> (i32, i32) {
    %c0_i32 = arith.constant 0 : i32
    return %arg0, %arg1 : i32, i32
  }
}

</mosaic_0001>

<bundles_post_ra>
// kernel: tpu_custom_call.1
= control target key start
LH: loop header
LB: loop body
LE: loop exit
PB: predicated region body
PF: predicated region fallthrough
CT: control target
= control target key end

     0   :  { %10 = vsyncpa [#allocation4], 0  ;;  %s722_s0 = inlined_call_operand.hbm [shape: f32[24,32], index: 0, kind: input, shape index: {}]   ;;  %s723_s1 = inlined_call_operand.hbm [shape: f32[32,64], index: 1, kind: input, shape index: {}]   ;;  %s724_s2 = inlined_call_operand.hbm [shape: f32[1,64], index: 2, kind: input, shape index: {}]   ;;  %s725_s3 = inlined_call_operand.hbm [shape: f32[64,256], index: 3, kind: input, shape index: {}]   ;;  %s726_s4 = inlined_call_operand.hbm [shape: f32[1,256], index: 4, kind: input, shape index: {}]   ;;  %s727_s5 = inlined_call_operand.hbm [shape: f32[24,256], index: 5, kind: output, shape index: {}]  }
   0x1   :  { %11 = vsyncpa [#allocation7], 0 }
   0x2   :  { %12 = vsyncpa [#allocation10], 0 }
   0x3   :  { %13 = vsyncpa [#allocation5], 0  ;;  %s573_s18 = smov [#allocation6]   ;;  %s574_s20 = smov [#allocation9]  }
   0x4   :  { %s31_s19 = sshll.u32 %s573_s18, 4  ;;  %s53_s21 = sshll.u32 %s574_s20, 4  ;;  %s32_s19 = int_to_ptr.vmem [resolvable:$true] %s31_s19  ;;  %s616_s21 = int_to_ptr.vmem [resolvable:$true] %s53_s21 }
   0x5   :  { %s433_s24 = scalar_lea.hbm %s723_s1, 512 }
   0x6   :  { %p434_p0 = scmp.ne.s32.totalorder %s723_s1, %s433_s24  ;;  %p437_p1 = scmp.lt.u32.totalorder %s433_s24, %s723_s1 }
   0x8   :  { %p439_p2 = pnand %p437_p1, %p434_p0 }
   0xa   :  { %442 = shalt.err (!%p439_p2)
}
   0xb   :  { %s443_s29 = scalar_lea.vmem %s32_s19, 512  ;;  %p448_p4 = scmp.lt.s32.totalorder %s32_s19, %s32_s19 }
   0xc   :  { %p444_p3 = scmp.ne.s32.totalorder %s32_s19, %s443_s29  ;;  %p449_p5 = scmp.lt.s32.totalorder %s443_s29, %s443_s29 }
   0xe   :  { %p450_p6 = por %p449_p5, %p448_p4 }
  0x10   :  { %p451_p7 = pnand %p450_p6, %p444_p3 }
  0x12   :  { %454 = shalt.err (!%p451_p7)
}
  0x13   :  { %s575_s30 = smov 128   ;;  %s576_s6 = smov 8  }
  0x14   :  { %37 = dma.hbm_to_vmem [thread:$0]  %s723_s1, 512, %s32_s19, [#allocation7], %s575_s30, %s575_s30, %s576_s6  }
  0x15   :  { %s455_s11 = scalar_lea.hbm %s725_s3, 2048 }
  0x16   :  { %p456_p8 = scmp.ne.s32.totalorder %s725_s3, %s455_s11  ;;  %p459_p9 = scmp.lt.u32.totalorder %s455_s11, %s725_s3 }
  0x18   :  { %p461_p10 = pnand %p459_p9, %p456_p8 }
  0x1a   :  { %464 = shalt.err (!%p461_p10)
}
  0x1b   :  { %s465_s16 = scalar_lea.vmem %s616_s21, 2048  ;;  %p470_p12 = scmp.lt.s32.totalorder %s616_s21, %s616_s21 }
  0x1c   :  { %p466_p11 = scmp.ne.s32.totalorder %s616_s21, %s465_s16  ;;  %p471_p13 = scmp.lt.s32.totalorder %s465_s16, %s465_s16 }
  0x1e   :  { %p472_p0 = por %p471_p13, %p470_p12 }
  0x20   :  { %p473_p1 = pnand %p472_p0, %p466_p11 }
  0x22   :  { %476 = shalt.err (!%p473_p1)
}
  0x23   :  { %s577_s1 = smov 256   ;;  %s578_s17 = smov 16  }
  0x24   :  { %59 = dma.hbm_to_vmem [thread:$0]  %s725_s3, 2048, %s616_s21, [#allocation10], %s577_s1, %s577_s1, %s578_s17  }
  0x25   :  { %s579_s20 = smov [#allocation3]   ;;  %s580_s23 = smov [#allocation8]  }
  0x26   :  { %s19_s22 = sshll.u32 %s579_s20, 4  ;;  %s44_s24 = sshll.u32 %s580_s23, 4  ;;  %s20_s22 = int_to_ptr.vmem [resolvable:$true] %s19_s22  ;;  %s45_s24 = int_to_ptr.vmem [resolvable:$true] %s44_s24 }
  0x27   :  { %s477_s27 = scalar_lea.hbm %s722_s0, 384 }
  0x28   :  { %p478_p2 = scmp.ne.s32.totalorder %s722_s0, %s477_s27  ;;  %p481_p3 = scmp.lt.u32.totalorder %s477_s27, %s722_s0 }
  0x2a   :  { %p483_p4 = pnand %p481_p3, %p478_p2 }
  0x2c   :  { %486 = shalt.err (!%p483_p4)
}
  0x2d   :  { %s487_s3 = scalar_lea.vmem %s20_s22, 384  ;;  %p492_p6 = scmp.lt.s32.totalorder %s20_s22, %s20_s22 }
  0x2e   :  { %p488_p5 = scmp.ne.s32.totalorder %s20_s22, %s487_s3  ;;  %p493_p7 = scmp.lt.s32.totalorder %s487_s3, %s487_s3 }
  0x30   :  { %p494_p8 = por %p493_p7, %p492_p6 }
  0x32   :  { %p495_p9 = pnand %p494_p8, %p488_p5 }
  0x34   :  { %498 = shalt.err (!%p495_p9)
}
  0x35   :  { %25 = dma.hbm_to_vmem [thread:$0]  %s722_s0, 384, %s20_s22, [#allocation4], %s575_s30, %s575_s30, %s576_s6  }
  0x36   :  { %s499_s12 = scalar_lea.hbm %s724_s2, 16 }
  0x37   :  { %p500_p10 = scmp.ne.s32.totalorder %s724_s2, %s499_s12  ;;  %p503_p11 = scmp.lt.u32.totalorder %s499_s12, %s724_s2 }
  0x39   :  { %p505_p12 = pnand %p503_p11, %p500_p10 }
  0x3b   :  { %508 = shalt.err (!%p505_p12)
}
  0x3c   :  { %s509_s18 = scalar_lea.vmem %s45_s24, 16  ;;  %s513_s19 = scalar_lea.vmem %s45_s24, 32 }
  0x3d   :  { %p510_p13 = scmp.ne.s32.totalorder %s45_s24, %s509_s18  ;;  %p514_p0 = scmp.lt.s32.totalorder %s45_s24, %s45_s24 }
  0x3e   :  { %p515_p1 = scmp.lt.s32.totalorder %s513_s19, %s509_s18 }
  0x40   :  { %p516_p2 = por %p515_p1, %p514_p0 }
  0x42   :  { %p517_p3 = pnand %p516_p2, %p510_p13 }
  0x44   :  { %520 = shalt.err (!%p517_p3)
}
  0x45   :  { %47 = dma.hbm_to_vmem [thread:$0]  %s724_s2, 16, %s45_s24, [#allocation7]  }
  0x46   :  { %s581_s6 = smov [#allocation11]   ;;  %s521_s25 = scalar_lea.hbm %s726_s4, 32 }
  0x47   :  { %s66_s20 = sshll.u32 %s581_s6, 4  ;;  %p522_p4 = scmp.ne.s32.totalorder %s726_s4, %s521_s25  ;;  %s67_s20 = int_to_ptr.vmem [resolvable:$true] %s66_s20 }
  0x48   :  { %p525_p5 = scmp.lt.u32.totalorder %s521_s25, %s726_s4 }
  0x4a   :  { %p527_p6 = pnand %p525_p5, %p522_p4 }
  0x4c   :  { %530 = shalt.err (!%p527_p6)
}
  0x4d   :  { %s531_s7 = scalar_lea.vmem %s67_s20, 32  ;;  %p536_p8 = scmp.lt.s32.totalorder %s67_s20, %s67_s20 }
  0x4e   :  { %p532_p7 = scmp.ne.s32.totalorder %s67_s20, %s531_s7  ;;  %p537_p9 = scmp.lt.s32.totalorder %s531_s7, %s531_s7 }
  0x50   :  { %p538_p10 = por %p537_p9, %p536_p8 }
  0x52   :  { %p539_p11 = pnand %p538_p10, %p532_p7 }
  0x54   :  { %542 = shalt.err (!%p539_p11)
}
  0x55   :  { %69 = dma.hbm_to_vmem [thread:$0]  %s726_s4, 32, %s67_s20, [#allocation10]  }
  0x56   :  { %565 = dma.done.wait [#allocation4], 384  }
  0x57   :  { %566 = vsyncadd [#allocation4], 4294966912 }
  0x58   :  { %567 = dma.done.wait [#allocation7], 528  }
  0x59   :  { %568 = vsyncadd [#allocation7], 4294966768 }
  0x5a   :  { %569 = dma.done.wait [#allocation10], 2080  }
  0x5b   :  { %570 = vsyncadd [#allocation10], 4294965216  ;;  %v582_v0 = vmov 0.0|0.0   ;;  %vm583_vm0 = vmmov 0   ;;  %v584_v1 = vmov 0.0   ;;  %v92_v2 = vld [vmem:[#allocation6] sm:$0xff]  ;;  %v233_v63 = vlaneseq }
  0x5c   :  { %392 = vmatprep.subr.bf16.mxu0 %v582_v0  ;;  %383 = vmatprep.mubr.msk.f32.mxu0 %vm583_vm0, %v584_v1  ;;  %v93_v3 = vld [vmem:[#allocation6 + $0x8] sm:$0xff]  ;;  %v94_v4 = vld [vmem:[#allocation6 + $0x10] sm:$0xff]  ;;  %v95_v6 = vld [vmem:[#allocation6 + $0x18] sm:$0xff]  ;;  %vm103_vm1 = vcmask 261120   ;;  %vm208_vm2 = vcmask 523264   ;;  %s585_s4 = smov [#allocation12]  }
  0x5d   :  { %317 = vmatprep.mubr.f32.mxu1 %v584_v1  ;;  %v393_v5 = vpack.c.bf16 %v93_v3, %v92_v2  ;;  %v396_v7 = vpack.c.bf16 %v95_v6, %v94_v4  ;;  %v89_v8 = vld [vmem:[#allocation3] sm:$0xff]  ;;  %v90_v9 = vld [vmem:[#allocation3 + $0x8] sm:$0xff]  ;;  %v91_v10 = vld [vmem:[#allocation3 + $0x10] sm:$0xff]  ;;  %s347_s8 = sshll.u32 %s585_s4, 4  ;;  %s348_s8 = int_to_ptr.vmem [resolvable:$true] %s347_s8 }
  0x5e   :  { %v216_v11 = vld [vmem:[#allocation9 + $0x8] sm:$0xff]  ;;  %v218_v12 = vld [vmem:[#allocation9 + $0x18] sm:$0xff]  ;;  %v215_v14 = vld [vmem:[#allocation9] sm:$0xff]  ;;  %s543_s3 = scalar_lea.vmem %s348_s8, 768  ;;  %p548_p13 = scmp.lt.s32.totalorder %s348_s8, %s348_s8 }
  0x5f   :  { %394 = vmatpush3.bf16.msra.mxu0 %v393_v5  ;;  %v398_v13 = vpack.c.bf16 %v218_v12, %v216_v11  ;;  %v217_v15 = vld [vmem:[#allocation9 + $0x10] sm:$0xff]  ;;  %v220_v17 = vld [vmem:[#allocation9 + $0x28] sm:$0xff]  ;;  %v222_v18 = vld [vmem:[#allocation9 + $0x38] sm:$0xff]  ;;  %p544_p12 = scmp.ne.s32.totalorder %s348_s8, %s543_s3  ;;  %p549_p0 = scmp.lt.s32.totalorder %s543_s3, %s543_s3 }
  0x60   :  { %395 = vmatprep.subr.bf16.mxu0 %v582_v0  ;;  %v400_v16 = vpack.c.bf16 %v217_v15, %v215_v14  ;;  %v402_v19 = vpack.c.bf16 %v222_v18, %v220_v17  ;;  %v219_v20 = vld [vmem:[#allocation9 + $0x20] sm:$0xff]  ;;  %v221_v21 = vld [vmem:[#allocation9 + $0x30] sm:$0xff]  ;;  %v224_v23 = vld [vmem:[#allocation9 + $0x48] sm:$0xff]  ;;  %v234_v0 = vshrl.u32 %v233_v63, 7 }
  0x61   :  { %399 = vmatprep.subr.bf16.mxu1 %v398_v13  ;;  %v404_v22 = vpack.c.bf16 %v221_v21, %v219_v20  ;;  %v226_v24 = vld [vmem:[#allocation9 + $0x58] sm:$0xff]  ;;  %v223_v26 = vld [vmem:[#allocation9 + $0x40] sm:$0xff]  ;;  %v225_v27 = vld [vmem:[#allocation9 + $0x50] sm:$0xff]  ;;  %p550_p1 = por %p549_p0, %p548_p13 }
  0x62   :  { %401 = vmatpush1.bf16.msra.mxu1 %v400_v16  ;;  %v406_v25 = vpack.c.bf16 %v226_v24, %v224_v23  ;;  %v408_v28 = vpack.c.bf16 %v225_v27, %v223_v26  ;;  %v228_v29 = vld [vmem:[#allocation9 + $0x68] sm:$0xff]  ;;  %v230_v30 = vld [vmem:[#allocation9 + $0x78] sm:$0xff]  ;;  %v227_v32 = vld [vmem:[#allocation9 + $0x60] sm:$0xff]  ;;  %v235_v2 = vsub.s32 0, %v234_v0  ;;  %v239_v4 = vsub.s32 1, %v234_v0 }
  0x63   :  { %397 = vmatpush3.bf16.msra.mxu0 %v396_v7  ;;  %403 = vmatprep.subr.bf16.mxu1 %v402_v19  ;;  %v410_v31 = vpack.c.bf16 %v230_v30, %v228_v29  ;;  %v229_v33 = vld [vmem:[#allocation9 + $0x70] sm:$0xff]  ;;  %v361_v35 = vld [vmem:[#allocation8] ss:$0 sm:$0xff]  ;;  %v231_v3 = vld [vmem:[#allocation11] sm:$0x3]  ;;  %p551_p2 = pnand %p550_p1, %p544_p12 }
  0x64   :  { %v412_v34 = vpack.c.bf16 %v229_v33, %v227_v32  ;;  %v236_v5 = vrot.slane %v231_v3, %v235_v2  ;;  %v240_v6 = vrot.slane %v231_v3, %v239_v4 }
  0x66   :  { %384 = vmatmul.mubr.msk.f32.vlgmr.msra.gmra.mrb[0].mxu0 %vm103_vm1, %v89_v8  ;;  %405 = vmatpush1.bf16.msra.mxu1 %v404_v22 }
  0x67   :  { %386 = vmatprep.mubr.msk.f32.mxu0 %vm583_vm0, %v584_v1  ;;  %407 = vmatprep.subr.bf16.mxu1 %v406_v25 }
  0x6a   :  { %387 = vmatmul.mubr.msk.f32.gmra.mrb[2].mxu0 %vm103_vm1, %v90_v9  ;;  %409 = vmatpush1.bf16.msra.mxu1 %v408_v28 }
  0x6b   :  { %389 = vmatprep.mubr.msk.f32.mxu0 %vm583_vm0, %v584_v1  ;;  %411 = vmatprep.subr.bf16.mxu1 %v410_v31 }
  0x6e   :  { %390 = vmatmul.mubr.msk.f32.gmra.mrb[4].mxu0 %vm103_vm1, %v91_v10  ;;  %413 = vmatpush1.bf16.msra.mxu1 %v412_v34 }
 0x139   :  { %v179_v36 = vpop.f32.mrb[0].mxu0 }
 0x13a   :  { %v180_v37 = vadd.f32 %v361_v35, %v179_v36  ;;  %v385_v38 = vpop.f32.mrb[1].mxu0 }
 0x13c   :  { %v196_v39 = vmul.f32 0.70710677, %v180_v37  ;;  %v193_v49 = vmul.f32 0.5, %v180_v37 }
 0x13d   :  { %v184_v40 = vpop.f32.mrb[2].mxu0 }
 0x13e   :  { %427 = verf.f32 %v196_v39  ;;  %v185_v41 = vadd.f32 %v361_v35, %v184_v40  ;;  %v388_v42 = vpop.f32.mrb[3].mxu0 }
 0x140   :  { %v197_v43 = vmul.f32 0.70710677, %v185_v41  ;;  %v194_v53 = vmul.f32 0.5, %v185_v41 }
 0x141   :  { %v189_v44 = vpop.f32.mrb[4].mxu0 }
 0x142   :  { %429 = verf.f32 %v197_v43  ;;  %v190_v45 = vadd.f32 %v361_v35, %v189_v44  ;;  %v391_v46 = vpop.f32.mrb[5].mxu0 }
 0x144   :  { %v198_v47 = vmul.f32 0.70710677, %v190_v45  ;;  %v195_v57 = vmul.f32 0.5, %v190_v45 }
 0x146   :  { %431 = verf.f32 %v198_v47 }
 0x148   :  { %v428_v48 = vpop.eup %427 }
 0x149   :  { %v202_v50 = vadd.f32 1.0, %v428_v48 }
 0x14b   :  { %v205_v51 = vmul.f32 %v202_v50, %v193_v49 }
 0x14c   :  { %v430_v52 = vpop.eup %429 }
 0x14d   :  { %v203_v54 = vadd.f32 1.0, %v430_v52  ;;  %209 = vst.msk [vmem:[#allocation2] sm:$0xff] %vm208_vm2, %v205_v51 }
 0x14f   :  { %v206_v55 = vmul.f32 %v203_v54, %v194_v53 }
 0x150   :  { %v432_v56 = vpop.eup %431 }
 0x151   :  { %v204_v58 = vadd.f32 1.0, %v432_v56  ;;  %210 = vst.msk [vmem:[#allocation2 + $0x8] sm:$0xff] %vm208_vm2, %v206_v55 }
 0x153   :  { %v207_v59 = vmul.f32 %v204_v58, %v195_v57 }
 0x154   :  { %v212_v60 = vld [vmem:[#allocation2] sm:$0xff] }
 0x155   :  { %211 = vst.msk [vmem:[#allocation2 + $0x10] sm:$0xff] %vm208_vm2, %v207_v59  ;;  %365 = vmatmul.mubr.msk.f32.vlgmr.msra.gmra.mrb[0].mxu1 %vm208_vm2, %v212_v60 }
 0x156   :  { %323 = vmatprep.mubr.f32.mxu1 %v584_v1 }
 0x158   :  { %v213_v61 = vld [vmem:[#allocation2 + $0x8] sm:$0xff] }
 0x159   :  { %366 = vmatmul.mubr.msk.f32.gmra.mrb[2].mxu1 %vm208_vm2, %v213_v61 }
 0x15a   :  { %329 = vmatprep.mubr.f32.mxu1 %v584_v1 }
 0x15c   :  { %v214_v62 = vld [vmem:[#allocation2 + $0x10] sm:$0xff] }
 0x15d   :  { %367 = vmatmul.mubr.msk.f32.gmra.mrb[4].mxu1 %vm208_vm2, %v214_v62 }
 0x228   :  { %v319_v7 = vpop.f32.mrb[0].mxu1 }
 0x229   :  { %v320_v8 = vadd.f32 %v319_v7, %v236_v5  ;;  %v321_v9 = vpop.f32.mrb[1].mxu1 }
 0x22a   :  { %v322_v10 = vadd.f32 %v321_v9, %v240_v6 }
 0x22b   :  { %336 = vst [vmem:[#allocation12] sm:$0xff] %v320_v8 }
 0x22c   :  { %337 = vst [vmem:[#allocation12 + $0x8] sm:$0xff] %v322_v10  ;;  %v325_v11 = vpop.f32.mrb[2].mxu1 }
 0x22d   :  { %v326_v12 = vadd.f32 %v325_v11, %v236_v5  ;;  %v327_v13 = vpop.f32.mrb[3].mxu1 }
 0x22e   :  { %v328_v1 = vadd.f32 %v327_v13, %v240_v6 }
 0x22f   :  { %338 = vst [vmem:[#allocation12 + $0x10] sm:$0xff] %v326_v12 }
 0x230   :  { %339 = vst [vmem:[#allocation12 + $0x18] sm:$0xff] %v328_v1  ;;  %v331_v14 = vpop.f32.mrb[4].mxu1 }
 0x231   :  { %v332_v15 = vadd.f32 %v331_v14, %v236_v5  ;;  %v333_v16 = vpop.f32.mrb[5].mxu1 }
 0x232   :  { %v334_v17 = vadd.f32 %v333_v16, %v240_v6 }
 0x233   :  { %340 = vst [vmem:[#allocation12 + $0x20] sm:$0xff] %v332_v15 }
 0x234   :  { %341 = vst [vmem:[#allocation12 + $0x28] sm:$0xff] %v334_v17 }
 0x235   :  { %554 = shalt.err (!%p551_p2)
}
 0x236   :  { %s555_s10 = scalar_lea.hbm %s727_s5, 768 }
 0x237   :  { %p556_p3 = scmp.ne.s32.totalorder %s727_s5, %s555_s10  ;;  %p559_p4 = scmp.lt.u32.totalorder %s555_s10, %s727_s5 }
 0x239   :  { %p561_p5 = pnand %p559_p4, %p556_p3 }
 0x23b   :  { %564 = shalt.err (!%p561_p5)
}
 0x23c   :  { %353 = dma.vmem_to_hbm [thread:$0]  %s348_s8, 768, %s727_s5, [#allocation5], %s577_s1, %s577_s1, %s578_s17  }
 0x23d   :  { %571 = dma.done.wait [#allocation5], 768  }
 0x23e   :  { %572 = vsyncadd [#allocation5], 4294966528 }
 0x23f   :  { %357 = vsyncpa [#allocation4], 1 }
 0x240   :  { %358 = vsyncpa [#allocation7], 1 }
 0x241   :  { %359 = vsyncpa [#allocation10], 1 }
 0x242   :  { %360 = vsyncpa [#allocation5], 1 }

</bundles_post_ra>
